<compile_context>
chip_gen: v6e
topology: v6e:2x2x1
jax: 0.10.0
libtpu: 0.0.40
codegen_flags: <defaults>
</compile_context>

<pallas_src>
import jax
import jax.numpy as jnp
from jax.experimental import pallas as pl
from jax.experimental.pallas import tpu as pltpu

LANES = 128  # one vreg lane-width; must stay a multiple of 4 for the roll trick


def _round_up(x, m):
    return ((x + m - 1) // m) * m


def _shift_lanes(x, k):
    """Cyclic lane lookahead: result[..., j] = x[..., (j + k) % n]."""
    n = x.shape[-1]
    # pltpu.roll follows np.roll semantics: roll(x, s)[j] = x[j - s].
    return pltpu.roll(x, (-k) % n, x.ndim - 1)


def _bbox_transform_kernel(std_ref, mean_ref, sgn_ref, hsgn_ref,
                           boxes_ref, deltas_ref, out_ref):
    # boxes_ref / deltas_ref / out_ref: (tb, 128) f32 VMEM tiles of the
    # flattened streams; coordinate == lane % 4.
    # std/mean/sgn/hsgn refs: (1, 128) resident per-lane constant patterns.
    b = boxes_ref[...]
    d = deltas_ref[...]

    std_row = std_ref[...]        # (1, 128): std[c] replicated per lane group
    mean_row = mean_ref[...]      # (1, 128): mean[c]
    sgn_row = sgn_ref[...]        # (1, 128): +1 on x1/y1 lanes, -1 on x2/y2
    hsgn_row = hsgn_ref[...]      # (1, 128): -0.5 on x1/y1 lanes, +0.5 on x2/y2
    is_lo = sgn_row > 0.0         # broadcasts over sublanes in the selects below

    d_norm = d * std_row + mean_row

    # Partner coordinates within each aligned 4-lane box group.  128 % 4 == 0,
    # so wrap-around lanes always land on the opposite parity class and are
    # masked out by the parity selects.
    b_ahead = _shift_lanes(b, 2)         # x2/y2 seen from x1/y1 lanes
    b_behind = _shift_lanes(b, -2)       # x1/y1 seen from x2/y2 lanes
    d_ahead = _shift_lanes(d_norm, 2)    # dw/dh seen from dx/dy lanes
    d_behind = _shift_lanes(d_norm, -2)  # dx/dy seen from dw/dh lanes

    partner = jnp.where(is_lo, b_ahead, b_behind)   # the "other" corner
    size = sgn_row * (partner - b)                  # width / height (every lane)
    ctr = jnp.where(is_lo, b, b_behind) + 0.5 * size  # ctr_x / ctr_y
    dxy = jnp.where(is_lo, d_norm, d_behind)        # dx / dy
    dwh = jnp.where(is_lo, d_ahead, d_norm)         # dw / dh

    pred_ctr = ctr + dxy * size
    # Folded final select: out = pred_ctr -/+ 0.5 * exp(dwh) * size.
    out_ref[...] = pred_ctr + hsgn_row * (jnp.exp(dwh) * size)


def bbox_transform(boxes, deltas, mean=None, std=None, *, block_rows=4096):
    """boxes, deltas: (B, N, 4) -> pred_boxes: (B, N, 4) float32."""
    if mean is None:
        mean = jnp.array([0.0, 0.0, 0.0, 0.0], dtype=jnp.float32)
    else:
        mean = jnp.asarray(mean, dtype=jnp.float32)
    if std is None:
        std = jnp.array([0.1, 0.1, 0.2, 0.2], dtype=jnp.float32)
    else:
        std = jnp.asarray(std, dtype=jnp.float32)

    B, N, C = boxes.shape
    assert C == 4, "boxes must have 4 coordinates in the last dim"

    total = B * N * 4
    flat_b = boxes.astype(jnp.float32).reshape(-1)
    flat_d = deltas.astype(jnp.float32).reshape(-1)

    rem = total % LANES
    if rem:
        # TODO(synk): handle the <128-element tail fully in-kernel (scalar
        # prefetch of `total` + masked store on the last block) to avoid this
        # whole-array pad/slice copy on non-divisible shapes.
        pad = LANES - rem
        flat_b = jnp.pad(flat_b, (0, pad))
        flat_d = jnp.pad(flat_d, (0, pad))
        padded_total = total + pad
    else:
        padded_total = total
    rows = padded_total // LANES

    b2 = flat_b.reshape(rows, LANES)   # free bitcast when rem == 0
    d2 = flat_d.reshape(rows, LANES)

    # Per-lane constant patterns (coordinate id == lane % 4), resident in VMEM
    # across all grid steps.
    reps = LANES // 4
    std_pat = jnp.tile(std, reps).reshape(1, LANES)
    mean_pat = jnp.tile(mean, reps).reshape(1, LANES)
    sgn_pat = jnp.tile(jnp.array([1.0, 1.0, -1.0, -1.0], jnp.float32),
                       reps).reshape(1, LANES)
    hsgn_pat = jnp.tile(jnp.array([-0.5, -0.5, 0.5, 0.5], jnp.float32),
                        reps).reshape(1, LANES)

    # Block-row choice: big blocks, but keep the 1-D parallel grid >= 2 steps
    # whenever possible so v7x megacore can shard.  Rows that don't divide by
    # the block are handled by Pallas partial edge blocks (no padding needed).
    if rows <= block_rows:
        if rows >= 16:
            tb = _round_up(pl.cdiv(rows, 2), 8)   # ~2 grid steps, tb % 8 == 0
        else:
            tb = rows                              # single block == full rows
    else:
        tb = block_rows
    grid = (pl.cdiv(rows, tb),)

    tile_spec = pl.BlockSpec((tb, LANES), lambda i: (i, 0))
    pat_spec = pl.BlockSpec((1, LANES), lambda i: (0, 0))

    out2 = pl.pallas_call(
        _bbox_transform_kernel,
        out_shape=jax.ShapeDtypeStruct((rows, LANES), jnp.float32),
        grid_spec=pltpu.PrefetchScalarGridSpec(
            num_scalar_prefetch=0,
            grid=grid,
            in_specs=[pat_spec, pat_spec, pat_spec, pat_spec,
                      tile_spec, tile_spec],
            out_specs=tile_spec,
        ),
        compiler_params=pltpu.CompilerParams(
            dimension_semantics=("parallel",),
            vmem_limit_bytes=32 * 1024 * 1024,
        ),
        cost_estimate=pl.CostEstimate(
            flops=12 * total,
            transcendentals=total,
            bytes_accessed=3 * total * 4,
        ),
    )(std_pat, mean_pat, sgn_pat, hsgn_pat, b2, d2)

    if rem:
        return out2.reshape(-1)[:total].reshape(B, N, 4)
    return out2.reshape(B, N, 4)


def _reference(boxes, deltas, mean, std):
    widths = boxes[:, :, 2] - boxes[:, :, 0]
    heights = boxes[:, :, 3] - boxes[:, :, 1]
    ctr_x = boxes[:, :, 0] + 0.5 * widths
    ctr_y = boxes[:, :, 1] + 0.5 * heights
    dx = deltas[:, :, 0] * std[0] + mean[0]
    dy = deltas[:, :, 1] * std[1] + mean[1]
    dw = deltas[:, :, 2] * std[2] + mean[2]
    dh = deltas[:, :, 3] * std[3] + mean[3]
    pred_ctr_x = ctr_x + dx * widths
    pred_ctr_y = ctr_y + dy * heights
    pred_w = jnp.exp(dw) * widths
    pred_h = jnp.exp(dh) * heights
    return jnp.stack(
        [
            pred_ctr_x - 0.5 * pred_w,
            pred_ctr_y - 0.5 * pred_h,
            pred_ctr_x + 0.5 * pred_w,
            pred_ctr_y + 0.5 * pred_h,
        ],
        axis=2,
    )


def _make_inputs(key, B, N):
    k1, k2, k3 = jax.random.split(key, 3)
    xy1 = jax.random.uniform(k1, (B, N, 2), minval=0.0, maxval=50.0)
    wh = jax.random.uniform(k2, (B, N, 2), minval=1.0, maxval=30.0)
    boxes = jnp.concatenate([xy1, xy1 + wh], axis=-1).astype(jnp.float32)
    deltas = jax.random.normal(k3, (B, N, 4), dtype=jnp.float32)
    return boxes, deltas


if __name__ == "__main__":
    key = jax.random.PRNGKey(0)
    mean = jnp.array([0.0, 0.0, 0.0, 0.0], dtype=jnp.float32)
    std = jnp.array([0.1, 0.1, 0.2, 0.2], dtype=jnp.float32)

    # Primary check (small shapes consistent with the module); total % 128 == 0,
    # so this exercises the zero-copy path with a 2-step parallel grid.
    boxes, deltas = _make_inputs(key, B=2, N=256)
    out = jax.block_until_ready(bbox_transform(boxes, deltas, mean, std))
    ref = _reference(boxes, deltas, mean, std)
    assert out.shape == (2, 256, 4)
    assert jnp.allclose(out, ref, atol=1e-4, rtol=1e-5)

    # Secondary check: ragged N exercising the tail pad + partial edge block.
    boxes2, deltas2 = _make_inputs(jax.random.PRNGKey(1), B=3, N=533)
    out2 = jax.block_until_ready(bbox_transform(boxes2, deltas2, mean, std))
    ref2 = _reference(boxes2, deltas2, mean, std)
    assert out2.shape == (3, 533, 4)
    assert jnp.allclose(out2, ref2, atol=1e-4, rtol=1e-5)

    print("KERNEL_OK")
</pallas_src>

<mosaic_0001>
module attributes {stable_mosaic.version = 11 : i64} {
  func.func @_bbox_transform_kernel(%arg0: i32, %arg1: memref<1x128xf32, #tpu.memory_space<vmem>>, %arg2: memref<1x128xf32, #tpu.memory_space<vmem>>, %arg3: memref<1x128xf32, #tpu.memory_space<vmem>>, %arg4: memref<1x128xf32, #tpu.memory_space<vmem>>, %arg5: memref<8x128xf32, #tpu.memory_space<vmem>>, %arg6: memref<8x128xf32, #tpu.memory_space<vmem>>, %arg7: memref<8x128xf32, #tpu.memory_space<vmem>>) attributes {dimension_semantics = [#tpu.dimension_semantics<parallel>], iteration_bounds = array<i64: 2>, scalar_prefetch = 0 : i64, scratch_operands = 0 : i64, tpu.core_type = #tpu.core_type<tc>, window_params = [{pipeline_mode = #tpu.pipeline_mode<synchronous>, transform_indices = @transform_0, window_bounds = array<i64: 1, 128>}, {pipeline_mode = #tpu.pipeline_mode<synchronous>, transform_indices = @transform_1, window_bounds = array<i64: 1, 128>}, {pipeline_mode = #tpu.pipeline_mode<synchronous>, transform_indices = @transform_2, window_bounds = array<i64: 1, 128>}, {pipeline_mode = #tpu.pipeline_mode<synchronous>, transform_indices = @transform_3, window_bounds = array<i64: 1, 128>}, {transform_indices = @transform_4, window_bounds = array<i64: 8, 128>}, {transform_indices = @transform_5, window_bounds = array<i64: 8, 128>}, {transform_indices = @transform_6, window_bounds = array<i64: 8, 128>}]} {
    %c0 = arith.constant 0 : index
    %c0_0 = arith.constant 0 : index
    %0 = vector.load %arg5[%c0, %c0_0] : memref<8x128xf32, #tpu.memory_space<vmem>>, vector<8x128xf32>
    %c0_1 = arith.constant 0 : index
    %c0_2 = arith.constant 0 : index
    %1 = vector.load %arg6[%c0_1, %c0_2] : memref<8x128xf32, #tpu.memory_space<vmem>>, vector<8x128xf32>
    %c0_3 = arith.constant 0 : index
    %c0_4 = arith.constant 0 : index
    %2 = vector.load %arg1[%c0_3, %c0_4] : memref<1x128xf32, #tpu.memory_space<vmem>>, vector<1x128xf32>
    %c0_5 = arith.constant 0 : index
    %c0_6 = arith.constant 0 : index
    %3 = vector.load %arg2[%c0_5, %c0_6] : memref<1x128xf32, #tpu.memory_space<vmem>>, vector<1x128xf32>
    %c0_7 = arith.constant 0 : index
    %c0_8 = arith.constant 0 : index
    %4 = vector.load %arg3[%c0_7, %c0_8] : memref<1x128xf32, #tpu.memory_space<vmem>>, vector<1x128xf32>
    %c0_9 = arith.constant 0 : index
    %c0_10 = arith.constant 0 : index
    %5 = vector.load %arg4[%c0_9, %c0_10] : memref<1x128xf32, #tpu.memory_space<vmem>>, vector<1x128xf32>
    %cst = arith.constant 0.000000e+00 : f32
    %6 = vector.broadcast %cst : f32 to vector<1x128xf32>
    %7 = arith.cmpf ogt, %4, %6 : vector<1x128xf32>
    %8 = vector.broadcast %2 : vector<1x128xf32> to vector<8x128xf32>
    %9 = arith.mulf %1, %8 : vector<8x128xf32>
    %10 = vector.broadcast %3 : vector<1x128xf32> to vector<8x128xf32>
    %11 = arith.addf %9, %10 : vector<8x128xf32>
    %c126_i32 = arith.constant 126 : i32
    %12 = tpu.dynamic_rotate %0 by %c126_i32 dim 1 : vector<8x128xf32>, i32 -> vector<8x128xf32>
    %c2_i32 = arith.constant 2 : i32
    %13 = tpu.dynamic_rotate %0 by %c2_i32 dim 1 : vector<8x128xf32>, i32 -> vector<8x128xf32>
    %c126_i32_11 = arith.constant 126 : i32
    %14 = tpu.dynamic_rotate %11 by %c126_i32_11 dim 1 : vector<8x128xf32>, i32 -> vector<8x128xf32>
    %c2_i32_12 = arith.constant 2 : i32
    %15 = tpu.dynamic_rotate %11 by %c2_i32_12 dim 1 : vector<8x128xf32>, i32 -> vector<8x128xf32>
    %16 = vector.shape_cast %7 : vector<1x128xi1> to vector<1x128xi1>
    %17 = vector.broadcast %16 : vector<1x128xi1> to vector<8x128xi1>
    %18 = arith.select %17, %12, %13 : vector<8x128xi1>, vector<8x128xf32>
    %19 = arith.subf %18, %0 : vector<8x128xf32>
    %20 = vector.broadcast %4 : vector<1x128xf32> to vector<8x128xf32>
    %21 = arith.mulf %20, %19 : vector<8x128xf32>
    %22 = vector.shape_cast %7 : vector<1x128xi1> to vector<1x128xi1>
    %23 = vector.broadcast %22 : vector<1x128xi1> to vector<8x128xi1>
    %24 = arith.select %23, %0, %13 : vector<8x128xi1>, vector<8x128xf32>
    %cst_13 = arith.constant 5.000000e-01 : f32
    %25 = vector.broadcast %cst_13 : f32 to vector<8x128xf32>
    %26 = arith.mulf %25, %21 : vector<8x128xf32>
    %27 = arith.addf %24, %26 : vector<8x128xf32>
    %28 = vector.shape_cast %7 : vector<1x128xi1> to vector<1x128xi1>
    %29 = vector.broadcast %28 : vector<1x128xi1> to vector<8x128xi1>
    %30 = arith.select %29, %11, %15 : vector<8x128xi1>, vector<8x128xf32>
    %31 = vector.shape_cast %7 : vector<1x128xi1> to vector<1x128xi1>
    %32 = vector.broadcast %31 : vector<1x128xi1> to vector<8x128xi1>
    %33 = arith.select %32, %14, %11 : vector<8x128xi1>, vector<8x128xf32>
    %34 = arith.mulf %30, %21 : vector<8x128xf32>
    %35 = arith.addf %27, %34 : vector<8x128xf32>
    %36 = math.exp %33 : vector<8x128xf32>
    %37 = arith.mulf %36, %21 : vector<8x128xf32>
    %38 = vector.broadcast %5 : vector<1x128xf32> to vector<8x128xf32>
    %39 = arith.mulf %38, %37 : vector<8x128xf32>
    %40 = arith.addf %35, %39 : vector<8x128xf32>
    %c0_14 = arith.constant 0 : index
    %c0_15 = arith.constant 0 : index
    %41 = vector.load %arg7[%c0_14, %c0_15] : memref<8x128xf32, #tpu.memory_space<vmem>>, vector<8x128xf32>
    tpu.vector_store %arg7[%c0_14, %c0_15], %40 {strides = array<i32>} : memref<8x128xf32, #tpu.memory_space<vmem>>, vector<8x128xf32>,
    return
  }
  func.func @transform_0(%arg0: i32) -> (i32, i32) {
    %c0_i32 = arith.constant 0 : i32
    %c0_i32_0 = arith.constant 0 : i32
    %c0_i32_1 = arith.constant 0 : i32
    return %c0_i32, %c0_i32_0 : i32, i32
  }
  func.func @transform_1(%arg0: i32) -> (i32, i32) {
    %c0_i32 = arith.constant 0 : i32
    %c0_i32_0 = arith.constant 0 : i32
    %c0_i32_1 = arith.constant 0 : i32
    return %c0_i32, %c0_i32_0 : i32, i32
  }
  func.func @transform_2(%arg0: i32) -> (i32, i32) {
    %c0_i32 = arith.constant 0 : i32
    %c0_i32_0 = arith.constant 0 : i32
    %c0_i32_1 = arith.constant 0 : i32
    return %c0_i32, %c0_i32_0 : i32, i32
  }
  func.func @transform_3(%arg0: i32) -> (i32, i32) {
    %c0_i32 = arith.constant 0 : i32
    %c0_i32_0 = arith.constant 0 : i32
    %c0_i32_1 = arith.constant 0 : i32
    return %c0_i32, %c0_i32_0 : i32, i32
  }
  func.func @transform_4(%arg0: i32) -> (i32, i32) {
    %c0_i32 = arith.constant 0 : i32
    %c0_i32_0 = arith.constant 0 : i32
    return %arg0, %c0_i32 : i32, i32
  }
  func.func @transform_5(%arg0: i32) -> (i32, i32) {
    %c0_i32 = arith.constant 0 : i32
    %c0_i32_0 = arith.constant 0 : i32
    return %arg0, %c0_i32 : i32, i32
  }
  func.func @transform_6(%arg0: i32) -> (i32, i32) {
    %c0_i32 = arith.constant 0 : i32
    %c0_i32_0 = arith.constant 0 : i32
    return %arg0, %c0_i32 : i32, i32
  }
}

</mosaic_0001>

<bundles_post_ra>
// kernel: tpu_custom_call.1
= control target key start
LH: loop header
LB: loop body
LE: loop exit
PB: predicated region body
PF: predicated region fallthrough
CT: control target
= control target key end

     0   :  { %s983_s0 = inlined_call_operand.hbm [shape: f32[1,128], index: 0, kind: input, shape index: {}]   ;;  %s984_s1 = inlined_call_operand.vmem [shape: f32[1,128], index: 1, kind: input, shape index: {}]   ;;  %s985_s2 = inlined_call_operand.vmem [shape: f32[1,128], index: 2, kind: input, shape index: {}]   ;;  %s986_s3 = inlined_call_operand.vmem [shape: f32[1,128], index: 3, kind: input, shape index: {}]   ;;  %s987_s4 = inlined_call_operand.hbm [shape: f32[16,128], index: 4, kind: input, shape index: {}]   ;;  %s988_s5 = inlined_call_operand.hbm [shape: f32[16,128], index: 5, kind: input, shape index: {}]   ;;  %s989_s6 = inlined_call_operand.hbm [shape: f32[16,128], index: 6, kind: output, shape index: {}]  }
   0x1   :  { %996 = sst [smem:[#allocation12_spill]] %s987_s4 }
   0x2   :  { %11 = vsyncpa [#allocation3], 0 }
   0x3   :  { %12 = vsyncpa [#allocation6], 0 }
   0x4   :  { %14 = vsyncpa [#allocation6 + $0x1], 0 }
   0x5   :  { %15 = vsyncpa [#allocation4], 0 }
   0x6   :  { %17 = vsyncpa [#allocation4 + $0x1], 0  ;;  %s774_s21 = smov 0   ;;  %s776_s22 = smov 0  }
   0x7   :  { %s778_s23 = smov 0   ;;  %s780_s24 = smov 0  }
   0x8 LB: > { %s795_s25 = sadd.s32 1, %s730_s24   ;;  %s114_s26 = sadd.s32 1, %s726_s23  ;;  %s730_s24 = sphi %s780_s24, %s1016_s24   ;;  %s726_s23 = sphi %s778_s23, %s1015_s23   ;;  %s722_s22 = sphi %s776_s22, %s1014_s22   ;;  %s718_s21 = sphi %s774_s21, %s1013_s21  }
   0x9   : > { %s111_s27 = ssub.s32 %s730_s24, %s795_s25  ;;  %p990_p0 = scmp.ne.s32.totalorder %s726_s23, %s722_s22 }
   0xa   : > { %p112_p1 = scmp.eq.s32.totalorder %s111_s27, 0  ;;  %p122_p2 = scmp.eq.s32.totalorder %s730_s24, 0 }
   0xb   : > { %p539_p4 = scmp.lt.s32.totalorder %s730_s24, 2  ;;  %s223_s29 = sand.u32 1, %s730_s24  }
   0xc   : > { %s806_s28 = scalar_select %p112_p1, %s726_s23, %s114_s26  }
   0xd   : > { %p123_p5 = por %p122_p2, %p990_p0  ;;  %s225_s30 = sand.u32 1, %s726_s23  }
   0xe   : > { %s813_s7 = sshll.u32 %s225_s30, 3  ;;  %s498_s8 = sshll.u32 %s730_s24, 7 }
   0xf   : > { %s997_s4 = sld [smem:[#allocation12_spill]]  ;;  %s227_s12 = scalar_lea.vmem [#allocation5], %s813_s7 }
  0x10   : > { %s234_s13 = sshll.u32 %s227_s12, 4  ;;  %p824_p6 = pnand %p539_p4, %p123_p5  ;;  %s235_s13 = int_to_ptr.vmem [resolvable:$true] %s234_s13 }
  0x11   : > { %s828_s15 = scalar_lea.sflag [#allocation6], %s223_s29 }
  0x12   : > { %p582_p8 = pneg %p824_p6 }
  0x15   : > { %s821_s11 = scalar_lea.hbm %s997_s4, %s498_s8  ;;  %s585_s19 = scalar_lea.hbm %s997_s4, 256 }
  0x16   : > { %s580_s16 = scalar_lea.hbm %s821_s11, 128  ;;  %p586_p11 = scmp.lt.s32.totalorder %s821_s11, %s997_s4 }
  0x17   : > { %p581_p7 = scmp.ne.s32.totalorder %s821_s11, %s580_s16  ;;  %p587_p12 = scmp.lt.s32.totalorder %s585_s19, %s580_s16 }
  0x19   : > { %p583_p9 = pnand %p582_p8, %p581_p7  ;;  %p588_p13 = por %p587_p12, %p586_p11 }
  0x1b   : > { %p584_p10 = pneg %p583_p9 }
  0x1d   : > { %p589_p1 = pnand %p588_p13, %p584_p10 }
  0x1f   : > { %592 = shalt.err (!%p589_p1)
}
  0x20   : > { %s593_s27 = scalar_lea.vmem %s235_s13, 128  ;;  %s732_s29 = smov [#allocation5]  }
  0x21   : > { %p594_p2 = scmp.ne.s32.totalorder %s235_s13, %s593_s27  ;;  %s598_s30 = sshll.u32 %s732_s29, 4  ;;  %s599_s30 = int_to_ptr.vmem [resolvable:$false] %s598_s30 }
  0x22   : > { %s600_s9 = scalar_lea.vmem %s599_s30, 256  ;;  %p601_p7 = scmp.lt.s32.totalorder %s235_s13, %s599_s30 }
  0x23   : > { %p596_p4 = pnand %p594_p2, %p582_p8  ;;  %p602_p9 = scmp.lt.s32.totalorder %s600_s9, %s593_s27 }
  0x25   : > { %p597_p5 = pneg %p596_p4  ;;  %p603_p3 = por %p602_p9, %p601_p7 }
  0x27   : > { %p604_p0 = pnand %p603_p3, %p597_p5 }
  0x29   : > { %607 = shalt.err (!%p604_p0)
}
  0x2a   : > { %530 = dma.hbm_to_vmem [thread:$0]  (!%p824_p6), %s821_s11, 128, %s235_s13, %s828_s15  }
  0x2b   : > { %s852_s10 = sadd.s32 4294967295, %s730_s24   ;;  %s493_s12 = sadd.s32 4294967294, %s730_s24  }
  0x2c   : > { %p127_p0 = scmp.ne.s32.totalorder %s722_s22, %s718_s21  ;;  %p991_p3 = scmp.eq.s32.totalorder %s852_s10, 0 }
  0x2d   : > { %p177_p10 = scmp.eq.s32.totalorder %s852_s10, 1  ;;  %p183_p11 = scmp.eq.s32.totalorder %s493_s12, 1 }
  0x2e   : > { %p861_p12 = por %p991_p3, %p127_p0  ;;  %p494_p13 = scmp.ge.s32.totalorder %s730_s24, 1 }
  0x2f   : > { %p1000_p1 = scmp.ne.s32.totalorder %s726_s23, %s722_s22  ;;  %p873_p4 = por %p183_p11, %p127_p0 }
  0x30   : > { %s999_s16 = scalar_select %p861_p12, 1, 0 }
  0x31   : > { %p869_p2 = por %p177_p10, %p1000_p1  ;;  %p190_p5 = scmp.lt.s32.totalorder %s730_s24, 3 }
  0x32   : > { %s1002_s13 = scalar_select %p873_p4, 1, 0 }
  0x33   : > { %s1001_s11 = scalar_select %p869_p2, 1, 0 }
  0x34   : > { %s245_s17 = scalar_lea.vmem [#allocation7], %s813_s7  ;;  %s884_s26 = scalar_lea.hbm %s988_s5, %s498_s8 }
  0x35   : > { %s252_s18 = sshll.u32 %s245_s17, 4  ;;  %p886_p7 = pnand %p494_p13, %p190_p5  ;;  %s253_s18 = int_to_ptr.vmem [resolvable:$true] %s252_s18 }
  0x36   : > { %s733_s29 = smov [#allocation2]   ;;  %s608_s7 = scalar_lea.hbm %s884_s26, 128 }
  0x37   : > { %s1003_s27 = scalar_select %p886_p7, 1, 0 }
  0x38   : > { %s203_s30 = sshll.u32 %s733_s29, 4  ;;  %p609_p0 = scmp.ne.s32.totalorder %s884_s26, %s608_s7  ;;  %s204_s30 = int_to_ptr.vmem [resolvable:$true] %s203_s30 }
  0x39   : > { %s613_s12 = scalar_lea.hbm %s988_s5, 256  ;;  %p614_p13 = scmp.lt.s32.totalorder %s884_s26, %s988_s5 }
  0x3a   : > { %p611_p10 = pnand %p609_p0, %p582_p8  ;;  %p615_p1 = scmp.lt.s32.totalorder %s613_s12, %s608_s7 }
  0x3c   : > { %p612_p11 = pneg %p611_p10  ;;  %p616_p5 = por %p615_p1, %p614_p13 }
  0x3e   : > { %p617_p3 = pnand %p616_p5, %p612_p11 }
  0x40   : > { %620 = shalt.err (!%p617_p3)
}
  0x41   : > { %s621_s20 = scalar_lea.vmem %s253_s18, 128  ;;  %s734_s29 = smov [#allocation7]  }
  0x42   : > { %p622_p9 = scmp.ne.s32.totalorder %s253_s18, %s621_s20  ;;  %s626_s4 = sshll.u32 %s734_s29, 4  ;;  %s627_s4 = int_to_ptr.vmem [resolvable:$false] %s626_s4 }
  0x43   : > { %s628_s8 = scalar_lea.vmem %s627_s4, 256  ;;  %p629_p10 = scmp.lt.s32.totalorder %s253_s18, %s627_s4 }
  0x44   : > { %p624_p4 = pnand %p622_p9, %p582_p8  ;;  %p630_p2 = scmp.lt.s32.totalorder %s628_s8, %s621_s20 }
  0x46   : > { %p625_p0 = pneg %p624_p4  ;;  %p631_p12 = por %p630_p2, %p629_p10 }
  0x48   : > { %p632_p7 = pnand %p631_p12, %p625_p0 }
  0x4a   : > { %635 = shalt.err (!%p632_p7)
}
  0x4b   : > { %533 = dma.hbm_to_vmem [thread:$0]  (!%p824_p6), %s884_s26, 128, %s253_s18, %s828_s15  }
  0x4c   : > { %p1004_p3 = scmp.eq.s32.totalorder %s852_s10, 0  ;;  %p1005_p8 = scmp.ne.s32.totalorder %s1003_s27, 0 }
  0x4d   : > { %s647_s7 = scalar_lea.vmem %s204_s30, 16  ;;  %s654_s4 = scalar_lea.vmem %s204_s30, 32 }
  0x4e   : > { %p1006_p4 = pneg %p1005_p8  ;;  %p648_p13 = scmp.ne.s32.totalorder %s204_s30, %s647_s7 }
  0x4f   : > { %p655_p12 = scmp.lt.s32.totalorder %s204_s30, %s204_s30  ;;  %p656_p2 = scmp.lt.s32.totalorder %s654_s4, %s647_s7 }
  0x50   : > { %p524_p9 = pnand %p1006_p4, %p1004_p3 }
  0x51   : > { %p657_p7 = por %p656_p2, %p655_p12 }
  0x52   : > { %p638_p11 = pneg %p524_p9 }
  0x54   : > { %p650_p1 = pnand %p648_p13, %p638_p11 }
  0x56   : > { %p651_p5 = pneg %p650_p1 }
  0x58   : > { %p658_p0 = pnand %p657_p7, %p651_p5 }
  0x5a   : > { %661 = shalt.err (!%p658_p0)
}
  0x5b   : > { %526 = dma.hbm_to_vmem [thread:$0]  (!%p524_p9), %s983_s0, 16, %s204_s30, [#allocation3]  }
  0x5c   : > { %261 = sbr.rel (%p1005_p8) target bundleno = 260 (0x104), region = 44  ;;  %p1007_p6 = scmp.eq.s32.totalorder (!%p1005_p8), %s852_s10, 0 }
  0x61   : > { %705 = dma.done.wait (%p1007_p6), [#allocation3], 16   ;;  %p1008_p10 = pmov %p1007_p6 }
  0x62   : > { %s267_s15 = sand.u32 1, %s852_s10   ;;  %s269_s18 = sand.u32 1, %s722_s22  }
  0x63   : > { %707 = vsyncadd (%p1008_p10), [#allocation3], 4294967280  ;;  %s929_s26 = sshll.u32 %s269_s18, 3  ;;  %s268_s30 = scalar_lea.sflag [#allocation6], %s267_s15 }
  0x64   : > { %s271_s12 = scalar_lea.vmem [#allocation5], %s929_s26  ;;  %p1009_p3 = scmp.ne.s32.totalorder %s999_s16, 0 }
  0x66   : > { %709 = dma.done.wait (%p1009_p3), %s268_s30, 256  }
  0x67   : > { %711 = vsyncadd (%p1009_p3), %s268_s30, 4294967040  ;;  %s280_s27 = scalar_lea.vmem [#allocation7], %s929_s26  ;;  %v506_v1 = vld [vmem:[#allocation2] ss:$0 sm:$0xff]  ;;  %v314_v4 = vld [vmem:[%s271_s12] sm:$0xff]  ;;  %s735_s20 = smov 2   ;;  %v344_v6 = vlaneseq }
  0x68   : > { %v315_v0 = vld [vmem:[%s280_s27] sm:$0xff]  ;;  %337 = vrot.lane.b32.xlu1 %v314_v4, %s735_s20  ;;  %s736_s29 = smov 126   ;;  %v737_v10 = vmov 0   ;;  %s510_s14 = sshll.u32 %s852_s10, 7 }
  0x69   : > { %v507_v2 = vld [vmem:[%s984_s1] ss:$0 sm:$0xff]  ;;  %v327_v3 = vmul.f32 %v506_v1, %v315_v0  ;;  %v345_v8 = vshrl.u32 %v344_v6, 7  ;;  %s313_s9 = scalar_lea.vmem [#allocation8], %s929_s26  ;;  %s389_s27 = scalar_lea.hbm %s989_s6, %s510_s14 }
  0x6a   : > { %v318_v7 = vld [vmem:[%s985_s2] sm:$0x1]  ;;  %s391_s15 = sshll.u32 %s313_s9, 4  ;;  %s378_s17 = scalar_lea.sflag [#allocation4], %s269_s18  ;;  %s392_s15 = int_to_ptr.vmem [resolvable:$true] %s391_s15 }
  0x6b   : > { %v334_v5 = vadd.f32 %v507_v2, %v327_v3  ;;  %vm320_vm0 = vcmp.gt.f32.partialorder %v318_v7, 0.0  ;;  %v346_v9 = vsub.s32 0, %v345_v8  ;;  %v508_v29 = vld [vmem:[%s986_s3] ss:$0 sm:$0xff]  ;;  %s662_s19 = scalar_lea.vmem %s392_s15, 128  ;;  %p1010_p4 = scmp.ne.s32.totalorder %s1001_s11, 0 }
  0x6c   : > { %v343_v11 = vsel %vm320_vm0, 1, %v737_v10  ;;  %p663_p8 = scmp.ne.s32.totalorder %s392_s15, %s662_s19 }
  0x6d   : > { %339 = vrot.lane.b32.xlu0 %v334_v5, %s736_s29  ;;  %341 = vrot.lane.b32.xlu1 %v334_v5, %s735_s20  ;;  %v347_v12 = vrot.slane %v343_v11, %v346_v9  ;;  %v355_v17 = vrot.slane %v318_v7, %v346_v9  ;;  %s738_s20 = smov [#allocation8]  }
  0x6e   : > { %p664_p9 = pnand %p663_p8, %p1010_p4  ;;  %s666_s10 = sshll.u32 %s738_s20, 4  ;;  %s667_s10 = int_to_ptr.vmem [resolvable:$false] %s666_s10 }
  0x6f   : > { %vm348_vm1 = vcmp.eq.s32.totalorder %v347_v12, 1  ;;  %s668_s26 = scalar_lea.vmem %s667_s10, 256  ;;  %p669_p13 = scmp.lt.s32.totalorder %s392_s15, %s667_s10 }
  0x70   : > { %p665_p11 = pneg %p664_p9  ;;  %p670_p1 = scmp.lt.s32.totalorder %s668_s26, %s662_s19 }
  0x71   : > { %335 = vrot.lane.b32.xlu0 %v314_v4, %s736_s29 }
  0x72   : > { %p671_p5 = por %p670_p1, %p669_p13 }
  0x74   : > { %p672_p12 = pnand %p671_p5, %p665_p11 }
  0xda   : > { %v338_v16 = vpop.permute.xlu1 %337 }
  0xdb   : > { %v358_v24 = vsel %vm348_vm1, %v314_v4, %v338_v16 }
  0xdf   : > { %v340_v13 = vpop.permute.xlu0 %339  ;;  %v342_v22 = vpop.permute.xlu1 %341 }
  0xe0   : > { %v362_v14 = vsel %vm348_vm1, %v340_v13, %v334_v5  ;;  %v361_v25 = vsel %vm348_vm1, %v334_v5, %v342_v22 }
  0xe1   : > { %v365_v15 = vmul.f32 1.442695, %v362_v14 }
  0xe3   : > { %578 = vpow2.f32 %v365_v15  ;;  %v336_v18 = vpop.permute.xlu0 %335 }
  0xe4   : > { %v349_v19 = vsel %vm348_vm1, %v336_v18, %v338_v16 }
  0xe5   : > { %v350_v20 = vsub.f32 %v349_v19, %v314_v4 }
  0xe7   : > { %v357_v21 = vmul.f32 %v355_v17, %v350_v20 }
  0xe9   : > { %v359_v23 = vmul.f32 0.5, %v357_v21  ;;  %v363_v27 = vmul.f32 %v361_v25, %v357_v21 }
  0xeb   : > { %v360_v26 = vadd.f32 %v359_v23, %v358_v24 }
  0xed   : > { %v364_v31 = vadd.f32 %v363_v27, %v360_v26 }
  0xf0   : > { %v579_v28 = vpop.eup %578 }
  0xf1   : > { %v367_v30 = vmul.f32 %v579_v28, %v357_v21 }
  0xf3   : > { %v374_v32 = vmul.f32 %v508_v29, %v367_v30 }
  0xf5   : > { %v375_v33 = vadd.f32 %v374_v32, %v364_v31 }
  0xf7   : > { %376 = vst [vmem:[%s313_s9] sm:$0xff] %v375_v33 }
  0xf8   : > { %675 = shalt.err (!%p672_p12)
}
  0xf9   : > { %s676_s29 = scalar_lea.hbm %s389_s27, 128  ;;  %s680_s8 = scalar_lea.hbm %s989_s6, 256 }
  0xfa   : > { %p677_p2 = scmp.ne.s32.totalorder %s389_s27, %s676_s29  ;;  %p681_p6 = scmp.lt.s32.totalorder %s389_s27, %s989_s6 }
  0xfb   : > { %p682_p10 = scmp.lt.s32.totalorder %s680_s8, %s676_s29 }
  0xfc   : > { %p678_p7 = pnand %p677_p2, %p1010_p4 }
  0xfd   : > { %p683_p3 = por %p682_p10, %p681_p6 }
  0xfe   : > { %p679_p0 = pneg %p678_p7 }
 0x100   : > { %p684_p8 = pnand %p683_p3, %p679_p0 }
 0x102   : > { %687 = shalt.err (!%p684_p8)
}
 0x103   : > { %521 = dma.vmem_to_hbm [thread:$0]  (%p1010_p4), %s392_s15, 128, %s389_s27, %s378_s17  }
 0x104 PF: > { %s403_s14 = sand.u32 1, %s718_s21   ;;  %p1011_p9 = scmp.ne.s32.totalorder %s1002_s13, 0 }
 0x105   : > { %p1012_p11 = scmp.ge.s32.totalorder %s730_s24, 2  ;;  %s404_s9 = scalar_lea.sflag [#allocation4], %s403_s14 }
 0x107   : > { %p535_p13 = pnand %p1012_p11, %p1011_p9 }
 0x109   : > { %p536_p1 = pneg %p535_p13 }
 0x10b   : > { %713 = dma.done.wait (%p536_p1), %s404_s9, 128  }
 0x10c   : > { %715 = vsyncadd (%p536_p1), %s404_s9, 4294967168  ;;  %p20_p5 = scmp.ge.s32.totalorder %s795_s25, 4   ;;  %s1013_s21 = smov %s722_s22 }
 0x10d   : > { %s1014_s22 = smov %s726_s23  ;;  %s1015_s23 = smov %s806_s28 }
 0x10e   : > { %s1016_s24 = smov %s795_s25  ;;  %22 = sbr.rel (!%p20_p5) target bundleno = 8 (0x8), region = 105 }
 0x113   :  { %409 = vsyncpa [#allocation3], 1 }
 0x114   :  { %411 = vsyncpa [#allocation3 + $0x1], 1 }
 0x115   :  { %412 = vsyncpa [#allocation6], 1 }
 0x116   :  { %414 = vsyncpa [#allocation6 + $0x1], 1 }
 0x117   :  { %415 = vsyncpa [#allocation4], 1 }
 0x118   :  { %417 = vsyncpa [#allocation4 + $0x1], 1 }

</bundles_post_ra>
